<compile_context>
chip_gen: v6e
topology: v6e:2x2x1
jax: 0.10.0
libtpu: 0.0.40
codegen_flags: <defaults>
</compile_context>

<pallas_src>
from math import sqrt

import jax
import jax.numpy as jnp
from jax.experimental import pallas as pl
from jax.experimental.pallas import tpu as pltpu

NUM_EMB = 100  # Embedding(100, hidden_channels) in the PyTorch module


def swish(x):
    return x * jax.nn.sigmoid(x)


def _round_up(x, m):
    return ((x + m - 1) // m) * m


def _make_kernel(h_pad, n_onehot):
    def kernel(zi_ref, zj_ref, rbf_ref,
               m12_ref, w_rbf_ref, w3_ref, b_rbf0_ref, b_lin_ref,
               e1_ref, e2_ref):
        t = zi_ref.shape[0]

        # Fused gather + x[i]/x[j] part of `lin`:
        #   x[i] @ W1 + x[j] @ W2 == onehot @ M12,   M12 = [Emb@W1 ; Emb@W2]
        iota = jax.lax.broadcasted_iota(jnp.int32, (t, n_onehot), 1)
        hit = jnp.logical_or(iota == zi_ref[...],
                             iota == zj_ref[...] + (n_onehot // 2))
        onehot = jnp.where(hit, 1.0, 0.0).astype(jnp.float32)
        h = jnp.dot(onehot, m12_ref[...], preferred_element_type=jnp.float32)

        # Fused lin_rbf_0 | lin_rbf_1: single [R, 2*h_pad] matmul, split lanes.
        rr = jnp.dot(rbf_ref[...], w_rbf_ref[...],
                     preferred_element_type=jnp.float32)
        rbf0 = swish(rr[:, :h_pad] + b_rbf0_ref[...])   # swish(lin_rbf_0(rbf))
        r1 = rr[:, h_pad:]                              # lin_rbf_1(rbf)

        # Remaining third of `lin` (rbf0 slice) + bias + activation.
        h = h + jnp.dot(rbf0, w3_ref[...], preferred_element_type=jnp.float32)
        e1 = swish(h + b_lin_ref[...])

        e1_ref[...] = e1
        e2_ref[...] = r1 * e1

    return kernel


def init_forward(x_nodes, rbf, i_idx, j_idx, params, *, tile_e=512):
    """
    x_nodes: [N]  int32 atomic numbers (indices into the 100-entry embedding)
    rbf:     [E, R] float32
    i_idx, j_idx: [E] int32 edge endpoints
    returns (e1, e2), each [E, H] float32
    """
    emb_w = params["emb_weight"]                 # [100, H]
    H = emb_w.shape[1]
    E, R = rbf.shape
    h_pad = _round_up(H, 128)                    # lane-dense output width
    dh = h_pad - H
    n_onehot = 2 * NUM_EMB

    hp = jax.lax.Precision.HIGHEST

    # ---- tiny one-time algebra outside the kernel (XLA glue) ---------------
    # Fold the embedding table into the x[i]/x[j] slices of `lin`.
    m1 = jnp.dot(emb_w, params["w1"], precision=hp)      # [100, H]
    m2 = jnp.dot(emb_w, params["w2"], precision=hp)      # [100, H]
    m12 = jnp.pad(jnp.concatenate([m1, m2], axis=0), ((0, 0), (0, dh)))
    # Fuse lin_rbf_0 | lin_rbf_1 into one [R, 2*h_pad] weight.
    w_rbf = jnp.concatenate(
        [jnp.pad(params["w_rbf0"], ((0, 0), (0, dh))),
         jnp.pad(params["w_rbf1"], ((0, 0), (0, dh)))], axis=-1)
    w3 = jnp.pad(params["w3"], ((0, dh), (0, dh)))       # [h_pad, h_pad]
    b_rbf0 = jnp.pad(params["b_rbf0"], ((0, 0), (0, dh)))
    b_lin = jnp.pad(params["b_lin"], ((0, 0), (0, dh)))

    # Per-edge atomic numbers: 8 bytes/edge of kernel input instead of
    # materializing [E, 2H] gathered embeddings in HBM.
    zi = jnp.take(x_nodes, i_idx, axis=0).astype(jnp.int32).reshape(E, 1)
    zj = jnp.take(x_nodes, j_idx, axis=0).astype(jnp.int32).reshape(E, 1)

    # ---- edge tiling (large tiles, remainder handled by padding) -----------
    # Clamp so there are at least 2 grid steps whenever E > 8 (keeps both
    # v7x TensorCores busy) and keep the tile a multiple of 8 sublanes.
    tile_e = max(8, min(_round_up(int(tile_e), 8),
                        _round_up(max(-(-E // 2), 1), 8)))
    e_pad = _round_up(E, tile_e)
    rbf_in = rbf
    if e_pad != E:
        pad = ((0, e_pad - E), (0, 0))
        zi = jnp.pad(zi, pad)
        zj = jnp.pad(zj, pad)
        rbf_in = jnp.pad(rbf, pad)

    grid = (e_pad // tile_e,)
    edge_idx_spec = pl.BlockSpec((tile_e, 1), lambda e: (e, 0))
    edge_rbf_spec = pl.BlockSpec((tile_e, R), lambda e: (e, 0))
    out_spec = pl.BlockSpec((tile_e, h_pad), lambda e: (e, 0))

    def full(shape):
        return pl.BlockSpec(shape, lambda e: (0,) * len(shape))

    out_shape = (jax.ShapeDtypeStruct((e_pad, h_pad), jnp.float32),
                 jax.ShapeDtypeStruct((e_pad, h_pad), jnp.float32))

    e1, e2 = pl.pallas_call(
        _make_kernel(h_pad, n_onehot),
        out_shape=out_shape,
        grid_spec=pltpu.PrefetchScalarGridSpec(
            num_scalar_prefetch=0,
            grid=grid,
            in_specs=[
                edge_idx_spec,             # zi
                edge_idx_spec,             # zj
                edge_rbf_spec,             # rbf
                full((n_onehot, h_pad)),   # m12 = [Emb@W1 ; Emb@W2]
                full((R, 2 * h_pad)),      # w_rbf = [w_rbf0 | w_rbf1]
                full((h_pad, h_pad)),      # w3 (lin, rbf0 slice)
                full((1, h_pad)),          # b_rbf0
                full((1, h_pad)),          # b_lin
            ],
            out_specs=[out_spec, out_spec],
        ),
        compiler_params=pltpu.CompilerParams(
            dimension_semantics=("parallel",)),
    )(zi, zj, rbf_in, m12, w_rbf, w3, b_rbf0, b_lin)

    return e1[:E, :H], e2[:E, :H]


def make_params(key, num_radial, hidden_channels):
    """Deterministic parameter init mirroring the PyTorch module shapes.

    PyTorch Linear stores W as [out, in]; here weights are kept as [in, out]
    so the kernel computes x @ W directly.
    """
    ks = jax.random.split(key, 7)
    H, R = hidden_channels, num_radial

    # Embedding(100, H).uniform_(-sqrt(3), sqrt(3))
    emb_weight = jax.random.uniform(ks[0], (NUM_EMB, H), jnp.float32,
                                    minval=-sqrt(3.0), maxval=sqrt(3.0))

    # lin_rbf_0: Linear(R, H)  (Kaiming-uniform-style bound 1/sqrt(fan_in))
    b0 = 1.0 / sqrt(R)
    w_rbf0 = jax.random.uniform(ks[1], (R, H), jnp.float32, -b0, b0)
    b_rbf0 = jax.random.uniform(ks[2], (1, H), jnp.float32, -b0, b0)

    # lin: Linear(3H, H) — split along the input dim into three [H, H] blocks
    b1 = 1.0 / sqrt(3 * H)
    w_lin = jax.random.uniform(ks[3], (3 * H, H), jnp.float32, -b1, b1)
    w1, w2, w3 = w_lin[:H], w_lin[H:2 * H], w_lin[2 * H:]
    b_lin = jax.random.uniform(ks[4], (1, H), jnp.float32, -b1, b1)

    # lin_rbf_1: Linear(R, H, bias=False) with glorot_orthogonal(scale=2.0)
    # TODO(synk): exact glorot_orthogonal init not reproduced; using a
    # variance-matched normal init (deterministic).
    w_rbf1 = jax.random.normal(ks[5], (R, H), jnp.float32) * sqrt(2.0 / (R + H))

    # TODO(synk): use_node_features=False branch (shared node_embedding vector)
    # not implemented; this mirrors the module's default (True) path.
    return dict(emb_weight=emb_weight, w_rbf0=w_rbf0, b_rbf0=b_rbf0,
                w1=w1, w2=w2, w3=w3, b_lin=b_lin, w_rbf1=w_rbf1)


def reference_forward(x_nodes, rbf, i_idx, j_idx, params):
    x_emb = jnp.take(params["emb_weight"], x_nodes, axis=0)
    xi, xj = x_emb[i_idx], x_emb[j_idx]
    rbf0 = swish(rbf @ params["w_rbf0"] + params["b_rbf0"])
    cat = jnp.concatenate([xi, xj, rbf0], axis=-1)
    w_lin = jnp.concatenate([params["w1"], params["w2"], params["w3"]], axis=0)
    e1 = swish(cat @ w_lin + params["b_lin"])
    e2 = (rbf @ params["w_rbf1"]) * e1
    return e1, e2


if __name__ == "__main__":
    key = jax.random.PRNGKey(0)
    k_par, k_x, k_rbf, k_i, k_j = jax.random.split(key, 5)

    num_radial = 8
    hidden_channels = 32
    num_nodes = 6
    num_edges = 16

    params = make_params(k_par, num_radial, hidden_channels)

    x_nodes = jax.random.randint(k_x, (num_nodes,), 0, 100, dtype=jnp.int32)
    rbf = jax.random.normal(k_rbf, (num_edges, num_radial), jnp.float32)
    i_idx = jax.random.randint(k_i, (num_edges,), 0, num_nodes, dtype=jnp.int32)
    j_idx = jax.random.randint(k_j, (num_edges,), 0, num_nodes, dtype=jnp.int32)

    fwd = jax.jit(init_forward)
    e1, e2 = fwd(x_nodes, rbf, i_idx, j_idx, params)
    jax.block_until_ready((e1, e2))

    e1_ref, e2_ref = reference_forward(x_nodes, rbf, i_idx, j_idx, params)
    assert e1.shape == (num_edges, hidden_channels)
    assert e2.shape == (num_edges, hidden_channels)
    assert jnp.allclose(e1, e1_ref, atol=2e-5, rtol=1e-4)
    assert jnp.allclose(e2, e2_ref, atol=2e-5, rtol=1e-4)

    print("KERNEL_OK")
</pallas_src>

<mosaic_0001>
module attributes {stable_mosaic.version = 11 : i64} {
  func.func @kernel(%arg0: i32, %arg1: memref<8x1xi32, #tpu.memory_space<vmem>>, %arg2: memref<8x1xi32, #tpu.memory_space<vmem>>, %arg3: memref<8x8xf32, #tpu.memory_space<vmem>>, %arg4: memref<200x128xf32, #tpu.memory_space<vmem>>, %arg5: memref<8x256xf32, #tpu.memory_space<vmem>>, %arg6: memref<128x128xf32, #tpu.memory_space<vmem>>, %arg7: memref<1x128xf32, #tpu.memory_space<vmem>>, %arg8: memref<1x128xf32, #tpu.memory_space<vmem>>, %arg9: memref<8x128xf32, #tpu.memory_space<vmem>>, %arg10: memref<8x128xf32, #tpu.memory_space<vmem>>) attributes {dimension_semantics = [#tpu.dimension_semantics<parallel>], iteration_bounds = array<i64: 2>, scalar_prefetch = 0 : i64, scratch_operands = 0 : i64, tpu.core_type = #tpu.core_type<tc>, window_params = [{transform_indices = @transform_0, window_bounds = array<i64: 8, 1>}, {transform_indices = @transform_1, window_bounds = array<i64: 8, 1>}, {transform_indices = @transform_2, window_bounds = array<i64: 8, 8>}, {pipeline_mode = #tpu.pipeline_mode<synchronous>, transform_indices = @transform_3, window_bounds = array<i64: 200, 128>}, {pipeline_mode = #tpu.pipeline_mode<synchronous>, transform_indices = @transform_4, window_bounds = array<i64: 8, 256>}, {pipeline_mode = #tpu.pipeline_mode<synchronous>, transform_indices = @transform_5, window_bounds = array<i64: 128, 128>}, {pipeline_mode = #tpu.pipeline_mode<synchronous>, transform_indices = @transform_6, window_bounds = array<i64: 1, 128>}, {pipeline_mode = #tpu.pipeline_mode<synchronous>, transform_indices = @transform_7, window_bounds = array<i64: 1, 128>}, {transform_indices = @transform_8, window_bounds = array<i64: 8, 128>}, {transform_indices = @transform_9, window_bounds = array<i64: 8, 128>}]} {
    %0 = tpu.iota {dimensions = array<i32: 1>} : vector<8x200xi32>
    %c0 = arith.constant 0 : index
    %c0_0 = arith.constant 0 : index
    %1 = vector.load %arg1[%c0, %c0_0] : memref<8x1xi32, #tpu.memory_space<vmem>>, vector<8x1xi32>
    %2 = vector.broadcast %1 : vector<8x1xi32> to vector<8x200xi32>
    %3 = arith.cmpi eq, %0, %2 : vector<8x200xi32>
    %c0_1 = arith.constant 0 : index
    %c0_2 = arith.constant 0 : index
    %4 = vector.load %arg2[%c0_1, %c0_2] : memref<8x1xi32, #tpu.memory_space<vmem>>, vector<8x1xi32>
    %c100_i32 = arith.constant 100 : i32
    %5 = vector.broadcast %c100_i32 : i32 to vector<8x1xi32>
    %6 = arith.addi %4, %5 : vector<8x1xi32>
    %7 = vector.broadcast %6 : vector<8x1xi32> to vector<8x200xi32>
    %8 = arith.cmpi eq, %0, %7 : vector<8x200xi32>
    %9 = arith.ori %3, %8 : vector<8x200xi1>
    %cst = arith.constant 1.000000e+00 : f32
    %cst_3 = arith.constant 0.000000e+00 : f32
    %10 = vector.broadcast %cst : f32 to vector<8x200xf32>
    %11 = vector.broadcast %cst_3 : f32 to vector<8x200xf32>
    %12 = arith.select %9, %10, %11 : vector<8x200xi1>, vector<8x200xf32>
    %c0_4 = arith.constant 0 : index
    %c0_5 = arith.constant 0 : index
    %13 = vector.load %arg4[%c0_4, %c0_5] : memref<200x128xf32, #tpu.memory_space<vmem>>, vector<200x128xf32>
    %cst_6 = arith.constant dense<0.000000e+00> : vector<8x128xf32>
    %14 = tpu.matmul %12, %13, %cst_6 {dimension_numbers = #tpu.dot_dimension_numbers<[1], [0], [0], [1], [0, 0, 1, 1], [], []>} : vector<8x200xf32>, vector<200x128xf32>, vector<8x128xf32> -> vector<8x128xf32>
    %c0_7 = arith.constant 0 : index
    %c0_8 = arith.constant 0 : index
    %15 = vector.load %arg3[%c0_7, %c0_8] : memref<8x8xf32, #tpu.memory_space<vmem>>, vector<8x8xf32>
    %c0_9 = arith.constant 0 : index
    %c0_10 = arith.constant 0 : index
    %16 = vector.load %arg5[%c0_9, %c0_10] : memref<8x256xf32, #tpu.memory_space<vmem>>, vector<8x256xf32>
    %cst_11 = arith.constant dense<0.000000e+00> : vector<8x256xf32>
    %17 = tpu.matmul %15, %16, %cst_11 {dimension_numbers = #tpu.dot_dimension_numbers<[1], [0], [0], [1], [0, 0, 1, 1], [], []>} : vector<8x8xf32>, vector<8x256xf32>, vector<8x256xf32> -> vector<8x256xf32>
    %18 = vector.extract_strided_slice %17 {offsets = [0, 0], sizes = [8, 128], strides = [1, 1]} : vector<8x256xf32> to vector<8x128xf32>
    %c0_12 = arith.constant 0 : index
    %c0_13 = arith.constant 0 : index
    %19 = vector.load %arg7[%c0_12, %c0_13] : memref<1x128xf32, #tpu.memory_space<vmem>>, vector<1x128xf32>
    %20 = vector.broadcast %19 : vector<1x128xf32> to vector<8x128xf32>
    %21 = arith.addf %18, %20 : vector<8x128xf32>
    %22 = arith.negf %21 : vector<8x128xf32>
    %23 = math.exp %22 : vector<8x128xf32>
    %cst_14 = arith.constant 1.000000e+00 : f32
    %24 = vector.broadcast %cst_14 : f32 to vector<8x128xf32>
    %25 = arith.addf %24, %23 : vector<8x128xf32>
    %26 = arith.divf %24, %25 : vector<8x128xf32>
    %27 = arith.mulf %21, %26 : vector<8x128xf32>
    %28 = vector.extract_strided_slice %17 {offsets = [0, 128], sizes = [8, 128], strides = [1, 1]} : vector<8x256xf32> to vector<8x128xf32>
    %c0_15 = arith.constant 0 : index
    %c0_16 = arith.constant 0 : index
    %29 = vector.load %arg6[%c0_15, %c0_16] : memref<128x128xf32, #tpu.memory_space<vmem>>, vector<128x128xf32>
    %cst_17 = arith.constant dense<0.000000e+00> : vector<8x128xf32>
    %30 = tpu.matmul %27, %29, %cst_17 {dimension_numbers = #tpu.dot_dimension_numbers<[1], [0], [0], [1], [0, 0, 1, 1], [], []>} : vector<8x128xf32>, vector<128x128xf32>, vector<8x128xf32> -> vector<8x128xf32>
    %31 = arith.addf %14, %30 : vector<8x128xf32>
    %c0_18 = arith.constant 0 : index
    %c0_19 = arith.constant 0 : index
    %32 = vector.load %arg8[%c0_18, %c0_19] : memref<1x128xf32, #tpu.memory_space<vmem>>, vector<1x128xf32>
    %33 = vector.broadcast %32 : vector<1x128xf32> to vector<8x128xf32>
    %34 = arith.addf %31, %33 : vector<8x128xf32>
    %35 = arith.negf %34 : vector<8x128xf32>
    %36 = math.exp %35 : vector<8x128xf32>
    %cst_20 = arith.constant 1.000000e+00 : f32
    %37 = vector.broadcast %cst_20 : f32 to vector<8x128xf32>
    %38 = arith.addf %37, %36 : vector<8x128xf32>
    %39 = arith.divf %37, %38 : vector<8x128xf32>
    %40 = arith.mulf %34, %39 : vector<8x128xf32>
    %c0_21 = arith.constant 0 : index
    %c0_22 = arith.constant 0 : index
    %41 = vector.load %arg9[%c0_21, %c0_22] : memref<8x128xf32, #tpu.memory_space<vmem>>, vector<8x128xf32>
    tpu.vector_store %arg9[%c0_21, %c0_22], %40 {strides = array<i32>} : memref<8x128xf32, #tpu.memory_space<vmem>>, vector<8x128xf32>,
    %42 = arith.mulf %28, %40 : vector<8x128xf32>
    %c0_23 = arith.constant 0 : index
    %c0_24 = arith.constant 0 : index
    %43 = vector.load %arg10[%c0_23, %c0_24] : memref<8x128xf32, #tpu.memory_space<vmem>>, vector<8x128xf32>
    tpu.vector_store %arg10[%c0_23, %c0_24], %42 {strides = array<i32>} : memref<8x128xf32, #tpu.memory_space<vmem>>, vector<8x128xf32>,
    return
  }
  func.func @transform_0(%arg0: i32) -> (i32, i32) {
    %c0_i32 = arith.constant 0 : i32
    %c0_i32_0 = arith.constant 0 : i32
    return %arg0, %c0_i32 : i32, i32
  }
  func.func @transform_1(%arg0: i32) -> (i32, i32) {
    %c0_i32 = arith.constant 0 : i32
    %c0_i32_0 = arith.constant 0 : i32
    return %arg0, %c0_i32 : i32, i32
  }
  func.func @transform_2(%arg0: i32) -> (i32, i32) {
    %c0_i32 = arith.constant 0 : i32
    %c0_i32_0 = arith.constant 0 : i32
    return %arg0, %c0_i32 : i32, i32
  }
  func.func @transform_3(%arg0: i32) -> (i32, i32) {
    %c0_i32 = arith.constant 0 : i32
    %c0_i32_0 = arith.constant 0 : i32
    %c0_i32_1 = arith.constant 0 : i32
    return %c0_i32, %c0_i32_0 : i32, i32
  }
  func.func @transform_4(%arg0: i32) -> (i32, i32) {
    %c0_i32 = arith.constant 0 : i32
    %c0_i32_0 = arith.constant 0 : i32
    %c0_i32_1 = arith.constant 0 : i32
    return %c0_i32, %c0_i32_0 : i32, i32
  }
  func.func @transform_5(%arg0: i32) -> (i32, i32) {
    %c0_i32 = arith.constant 0 : i32
    %c0_i32_0 = arith.constant 0 : i32
    %c0_i32_1 = arith.constant 0 : i32
    return %c0_i32, %c0_i32_0 : i32, i32
  }
  func.func @transform_6(%arg0: i32) -> (i32, i32) {
    %c0_i32 = arith.constant 0 : i32
    %c0_i32_0 = arith.constant 0 : i32
    %c0_i32_1 = arith.constant 0 : i32
    return %c0_i32, %c0_i32_0 : i32, i32
  }
  func.func @transform_7(%arg0: i32) -> (i32, i32) {
    %c0_i32 = arith.constant 0 : i32
    %c0_i32_0 = arith.constant 0 : i32
    %c0_i32_1 = arith.constant 0 : i32
    return %c0_i32, %c0_i32_0 : i32, i32
  }
  func.func @transform_8(%arg0: i32) -> (i32, i32) {
    %c0_i32 = arith.constant 0 : i32
    %c0_i32_0 = arith.constant 0 : i32
    return %arg0, %c0_i32 : i32, i32
  }
  func.func @transform_9(%arg0: i32) -> (i32, i32) {
    %c0_i32 = arith.constant 0 : i32
    %c0_i32_0 = arith.constant 0 : i32
    return %arg0, %c0_i32 : i32, i32
  }
}

</mosaic_0001>

<bundles_post_ra>
// kernel: init_forward.1
= control target key start
LH: loop header
LB: loop body
LE: loop exit
PB: predicated region body
PF: predicated region fallthrough
CT: control target
= control target key end

     0   :  { %s1435_s0 = inlined_call_operand.vmem [shape: s32[16,1], index: 0, kind: input, shape index: {}]   ;;  %s1436_s1 = inlined_call_operand.vmem [shape: s32[16,1], index: 1, kind: input, shape index: {}]   ;;  %s1437_s2 = inlined_call_operand.vmem [shape: f32[16,8], index: 2, kind: input, shape index: {}]   ;;  %s1438_s3 = inlined_call_operand.vmem [shape: f32[200,128], index: 3, kind: input, shape index: {}]   ;;  %s1439_s4 = inlined_call_operand.vmem [shape: f32[8,256], index: 4, kind: input, shape index: {}]   ;;  %s1440_s5 = inlined_call_operand.vmem [shape: f32[128,128], index: 5, kind: input, shape index: {}]   ;;  %s1441_s6 = inlined_call_operand.vmem [shape: f32[1,128], index: 6, kind: input, shape index: {}]   ;;  %s1442_s7 = inlined_call_operand.vmem [shape: f32[1,128], index: 7, kind: input, shape index: {}]   ;;  %s1443_s8 = inlined_call_operand.hbm [shape: f32[16,128], index: 8, kind: output, shape index: {0}]   ;;  %s1444_s9 = inlined_call_operand.hbm [shape: f32[16,128], index: 9, kind: output, shape index: {1}]  }
   0x1   :  { %1445 = sst [smem:[#allocation8_spill]] %s1435_s0 }
   0x2   :  { %1446 = sst [smem:[#allocation9_spill]] %s1436_s1 }
   0x3   :  { %1447 = sst [smem:[#allocation10_spill]] %s1437_s2 }
   0x4   :  { %15 = vsyncpa [#allocation3], 0 }
   0x5   :  { %17 = vsyncpa [#allocation3 + $0x1], 0 }
   0x6   :  { %18 = vsyncpa [#allocation5], 0 }
   0x7   :  { %20 = vsyncpa [#allocation5 + $0x1], 0  ;;  %s1115_s30 = smov 0   ;;  %s1117_s10 = smov 0  }
   0x8   :  { %s1119_s11 = smov 0   ;;  %s1121_s12 = smov 0  }
   0x9 LB: > { %s1136_s13 = sadd.s32 4294967295, %s1057_s12   ;;  %s836_s14 = sadd.s32 4294967294, %s1057_s12   ;;  %s1057_s12 = sphi %s1121_s12, %s1456_s12   ;;  %s1053_s11 = sphi %s1119_s11, %s1455_s11   ;;  %s1049_s10 = sphi %s1117_s10, %s1454_s10   ;;  %s1045_s30 = sphi %s1115_s30, %s1453_s30  }
   0xa   : > { %s1140_s15 = sadd.s32 1, %s1057_s12   ;;  %s216_s16 = sadd.s32 1, %s1053_s11 }
   0xb   : > { %s213_s17 = ssub.s32 %s1057_s12, %s1140_s15  ;;  %p226_p0 = scmp.ne.s32.totalorder %s1053_s11, %s1049_s10 }
   0xc   : > { %p214_p1 = scmp.eq.s32.totalorder %s213_s17, 0  ;;  %p227_p2 = scmp.eq.s32.totalorder %s1136_s13, 1 }
   0xd   : > { %p232_p3 = scmp.ne.s32.totalorder %s1049_s10, %s1045_s30  ;;  %p233_p4 = scmp.eq.s32.totalorder %s836_s14, 1 }
   0xe   : > { %s1151_s18 = scalar_select %p214_p1, %s1053_s11, %s216_s16  }
   0xf   : > { %p1153_p5 = por %p227_p2, %p226_p0  ;;  %p1157_p6 = por %p233_p4, %p232_p3 }
  0x10   : > { %p839_p7 = scmp.ge.s32.totalorder %s1057_s12, 1  ;;  %p313_p8 = scmp.lt.s32.totalorder %s1057_s12, 3 }
  0x12   : > { %p314_p9 = pnand %p839_p7, %p313_p8 }
  0x13   : > { %p361_p10 = scmp.lt.s32.totalorder (!%p314_p9), %s1136_s13, 1  ;;  %s1450_s2 = sld [smem:[#allocation10_spill]] (!%p314_p9) }
  0x14   : > { %317 = sbr.rel (%p314_p9) target bundleno = 525 (0x20d), region = 52  ;;  %s1451_s0 = sld [smem:[#allocation8_spill]] (!%p314_p9) }
  0x15   : > { %s1452_s1 = sld [smem:[#allocation9_spill]] (!%p314_p9)  ;;  %s1354_s26 = sand.u32 (!%p314_p9), 1, %s1049_s10  }
  0x19   : > { %v420_v0 = vld [vmem:[%s1439_s4 + $0x8] sm:$0xff]  ;;  %v419_v1 = vld [vmem:[%s1439_s4] sm:$0xff]  ;;  %v1059_v2 = vmov 0.0   ;;  %v408_v3 = vld [vmem:[%s1438_s3 + $0x78] sm:$0xff]  ;;  %s362_s27 = scalar_select %p361_p10, %s1136_s13, 1  ;;  %v1060_v4 = vmov 0   ;;  %v373_v49 = vlaneseq }
  0x1a   : > { %455 = vmatprep.subr.mxu1 %v420_v0  ;;  %489 = vmatprep.mubr.f32.mxu1 %v1059_v2  ;;  %v407_v5 = vld [vmem:[%s1438_s3 + $0x70] sm:$0xff]  ;;  %vm421_vm0 = vcmask 64512   ;;  %v406_v8 = vld [vmem:[%s1438_s3 + $0x68] sm:$0xff]  ;;  %v405_v11 = vld [vmem:[%s1438_s3 + $0x60] sm:$0xff]  ;;  %vm1061_vm1 = vmmov 0   ;;  %vm597_vm7 = vcmask 588800  }
  0x1b   : > { %456 = vmatpush1.msra.mxu1 %v419_v1  ;;  %958 = vset.pattern.permute.xlu0 %v1060_v4  ;;  %s842_s14 = sshll.u32 %s362_s27, 3  ;;  %v404_v12 = vld [vmem:[%s1438_s3 + $0x58] sm:$0xff]  ;;  %v403_v13 = vld [vmem:[%s1438_s3 + $0x50] sm:$0xff]  ;;  %v402_v14 = vld [vmem:[%s1438_s3 + $0x48] sm:$0xff]  ;;  %v374_v50 = vand.u32 127, %v373_v49  ;;  %v1062_v55 = vmov 1.0  }
  0x1c   : > { %601 = vmatprep.subr.mxu0 %v1059_v2  ;;  %875 = vmatprep.subr.mxu1 %v1059_v2  ;;  %s372_s21 = scalar_lea.vmem %s1450_s2, %s842_s14  ;;  %s364_s24 = scalar_lea.vmem %s1451_s0, %s842_s14  ;;  %v401_v15 = vld [vmem:[%s1438_s3 + $0x40] sm:$0xff]  ;;  %v400_v16 = vld [vmem:[%s1438_s3 + $0x38] sm:$0xff]  ;;  %v399_v17 = vld [vmem:[%s1438_s3 + $0x30] sm:$0xff] }
  0x1d   : > { %602 = vmatpush1.msra.mxu0 %v408_v3  ;;  %v418_v6 = vld [vmem:[%s372_s21] sm:$0xff]  ;;  %s368_s28 = scalar_lea.vmem %s1452_s1, %s842_s14  ;;  %v398_v18 = vld [vmem:[%s1438_s3 + $0x28] sm:$0xff]  ;;  %v396_v20 = vld [vmem:[%s1438_s3 + $0x18] sm:$0xff]  ;;  %v375_v51 = vadd.s32 128, %v374_v50  ;;  %s854_s27 = sshll.u32 %s1136_s13, 7 }
  0x1e   : > { %603 = vmatprep.subr.mxu0 %v1059_v2  ;;  %v376_v7 = vld [vmem:[%s364_s24] sm:$0xff]  ;;  %845 = vmatmul.mubr.msk.f32.vlgmr.msra.gmra.mxu1 %vm421_vm0, %v418_v6  ;;  %v526_v21 = vld [vmem:[%s1440_s5 + $0x78] sm:$0xff]  ;;  %v395_v22 = vld [vmem:[%s1438_s3 + $0x10] sm:$0xff]  ;;  %s1364_s23 = scalar_lea.hbm %s1443_s8, %s854_s27  ;;  %s1371_s25 = scalar_lea.hbm %s1444_s9, %s854_s27 }
  0x1f   : > { %604 = vmatpush1.msra.mxu0 %v407_v5  ;;  %378 = vperm.xlu0 %958, %v376_v7   ;;  %v382_v9 = vld [vmem:[%s368_s28] sm:$0xff]  ;;  %v525_v23 = vld [vmem:[%s1440_s5 + $0x70] sm:$0xff]  ;;  %v394_v24 = vld [vmem:[%s1438_s3 + $0x8] sm:$0xff]  ;;  %s840_s28 = sshll.u32 %s1354_s26, 3  ;;  %s1063_s14 = smov [#allocation2]  }
  0x20   : > { %v383_v10 = vadd.s32 100, %v382_v9  ;;  %605 = vmatprep.subr.mxu0 %v1059_v2  ;;  %v397_v19 = vld [vmem:[%s1438_s3 + $0x20] sm:$0xff]  ;;  %876 = vmatpush3.msra.mxu1 %v526_v21  ;;  %v524_v25 = vld [vmem:[%s1440_s5 + $0x68] sm:$0xff]  ;;  %v522_v29 = vld [vmem:[%s1440_s5 + $0x58] sm:$0xff]  ;;  %s353_s29 = scalar_lea.vmem [#allocation2], %s840_s28  ;;  %s1358_s17 = scalar_lea.vmem [#allocation4], %s840_s28 }
  0x21   : > { %606 = vmatpush1.msra.mxu0 %v406_v8  ;;  %877 = vmatprep.subr.mxu1 %v1059_v2  ;;  %v393_v26 = vld [vmem:[%s1438_s3] sm:$0xff]  ;;  %v416_v30 = vld [vmem:[%s1438_s3 + $0xb8] sm:$0xff]  ;;  %v521_v31 = vld [vmem:[%s1440_s5 + $0x50] sm:$0xff]  ;;  %s708_s16 = sshll.u32 %s353_s29, 4  ;;  %s721_s21 = sshll.u32 %s1358_s17, 4  ;;  %s1366_s16 = int_to_ptr.vmem [resolvable:$true] %s708_s16  ;;  %s1373_s21 = int_to_ptr.vmem [resolvable:$true] %s721_s21 }
  0x22   : > { %607 = vmatprep.subr.mxu0 %v1059_v2  ;;  %878 = vmatpush3.msra.mxu1 %v525_v23  ;;  %v523_v27 = vld [vmem:[%s1440_s5 + $0x60] sm:$0xff]  ;;  %v415_v32 = vld [vmem:[%s1438_s3 + $0xb0] sm:$0xff]  ;;  %v520_v33 = vld [vmem:[%s1440_s5 + $0x48] sm:$0xff]  ;;  %s690_s28 = scalar_lea.sflag [#allocation3], %s1354_s26  ;;  %s967_s0 = scalar_lea.vmem %s1366_s16, 128 }
  0x23   : > { %385 = vperm.xlu0 %958, %v383_v10   ;;  %608 = vmatpush1.msra.mxu0 %v405_v11  ;;  %v417_v28 = vld [vmem:[%s1438_s3 + $0xc0] sm:$0xff]  ;;  %v414_v34 = vld [vmem:[%s1438_s3 + $0xa8] sm:$0xff]  ;;  %v518_v37 = vld [vmem:[%s1440_s5 + $0x38] sm:$0xff]  ;;  %p968_p11 = scmp.ne.s32.totalorder %s1366_s16, %s967_s0  ;;  %s971_s22 = sshll.u32 %s1063_s14, 4  ;;  %s972_s22 = int_to_ptr.vmem [resolvable:$false] %s971_s22 }
  0x24   : > { %609 = vmatprep.subr.mxu0 %v1059_v2  ;;  %879 = vmatprep.subr.mxu1 %v1059_v2  ;;  %v519_v35 = vld [vmem:[%s1440_s5 + $0x40] sm:$0xff]  ;;  %v412_v38 = vld [vmem:[%s1438_s3 + $0x98] sm:$0xff]  ;;  %v517_v39 = vld [vmem:[%s1440_s5 + $0x30] sm:$0xff]  ;;  %s973_s1 = scalar_lea.vmem %s972_s22, 256  ;;  %p974_p0 = scmp.lt.s32.totalorder %s1366_s16, %s972_s22 }
  0x25   : > { %610 = vmatpush1.msra.mxu0 %v404_v12  ;;  %880 = vmatpush3.msra.mxu1 %v524_v25  ;;  %v413_v36 = vld [vmem:[%s1438_s3 + $0xa0] sm:$0xff]  ;;  %v411_v40 = vld [vmem:[%s1438_s3 + $0x90] sm:$0xff]  ;;  %v516_v41 = vld [vmem:[%s1440_s5 + $0x28] sm:$0xff]  ;;  %p969_p12 = pnand %p968_p11, %p1153_p5  ;;  %p975_p1 = scmp.lt.s32.totalorder %s973_s1, %s967_s0 }
  0x26   : > { %611 = vmatprep.subr.mxu0 %v1059_v2  ;;  %881 = vmatprep.subr.mxu1 %v1059_v2  ;;  %v410_v42 = vld [vmem:[%s1438_s3 + $0x88] sm:$0xff]  ;;  %v515_v43 = vld [vmem:[%s1440_s5 + $0x20] sm:$0xff]  ;;  %v514_v45 = vld [vmem:[%s1440_s5 + $0x18] sm:$0xff] }
  0x27   : > { %612 = vmatpush1.msra.mxu0 %v403_v13  ;;  %882 = vmatpush3.msra.mxu1 %v523_v27  ;;  %v409_v44 = vld [vmem:[%s1438_s3 + $0x80] sm:$0xff]  ;;  %v513_v46 = vld [vmem:[%s1440_s5 + $0x10] sm:$0xff]  ;;  %v512_v47 = vld [vmem:[%s1440_s5 + $0x8] sm:$0xff]  ;;  %p970_p13 = pneg %p969_p12  ;;  %p976_p2 = por %p975_p1, %p974_p0 }
  0x28   : > { %613 = vmatprep.subr.mxu0 %v1059_v2  ;;  %883 = vmatprep.subr.mxu1 %v1059_v2  ;;  %v511_v48 = vld [vmem:[%s1440_s5] sm:$0xff] }
  0x29   : > { %614 = vmatpush1.msra.mxu0 %v402_v14  ;;  %884 = vmatpush3.msra.mxu1 %v522_v29  ;;  %v846_v56 = vld [vmem:[%s1441_s6] ss:$0 sm:$0xff]  ;;  %p977_p3 = pnand %p976_p2, %p970_p13 }
  0x2a   : > { %615 = vmatprep.subr.mxu0 %v1059_v2  ;;  %885 = vmatprep.subr.mxu1 %v1059_v2  ;;  %v850_v4 = vld [vmem:[%s1442_s7] ss:$0 sm:$0xff] }
  0x2b   : > { %616 = vmatpush1.msra.mxu0 %v401_v15  ;;  %886 = vmatpush3.msra.mxu1 %v521_v31 }
  0x2c   : > { %617 = vmatprep.subr.mxu0 %v1059_v2  ;;  %887 = vmatprep.subr.mxu1 %v1059_v2 }
  0x2d   : > { %618 = vmatpush1.msra.mxu0 %v400_v16  ;;  %888 = vmatpush3.msra.mxu1 %v520_v33 }
  0x2e   : > { %619 = vmatprep.subr.mxu0 %v1059_v2  ;;  %889 = vmatprep.subr.mxu1 %v1059_v2 }
  0x2f   : > { %620 = vmatpush1.msra.mxu0 %v399_v17  ;;  %890 = vmatpush3.msra.mxu1 %v519_v35 }
  0x30   : > { %621 = vmatprep.subr.mxu0 %v1059_v2  ;;  %891 = vmatprep.subr.mxu1 %v1059_v2 }
  0x31   : > { %622 = vmatpush1.msra.mxu0 %v398_v18  ;;  %892 = vmatpush3.msra.mxu1 %v518_v37 }
  0x32   : > { %623 = vmatprep.subr.mxu0 %v1059_v2  ;;  %893 = vmatprep.subr.mxu1 %v1059_v2 }
  0x33   : > { %624 = vmatpush1.msra.mxu0 %v397_v19  ;;  %894 = vmatpush3.msra.mxu1 %v517_v39 }
  0x34   : > { %625 = vmatprep.subr.mxu0 %v1059_v2  ;;  %895 = vmatprep.subr.mxu1 %v1059_v2 }
  0x35   : > { %626 = vmatpush1.msra.mxu0 %v396_v20  ;;  %896 = vmatpush3.msra.mxu1 %v516_v41 }
  0x36   : > { %627 = vmatprep.subr.mxu0 %v1059_v2  ;;  %897 = vmatprep.subr.mxu1 %v1059_v2 }
  0x37   : > { %628 = vmatpush1.msra.mxu0 %v395_v22  ;;  %898 = vmatpush3.msra.mxu1 %v515_v43 }
  0x38   : > { %629 = vmatprep.subr.mxu0 %v1059_v2  ;;  %899 = vmatprep.subr.mxu1 %v1059_v2 }
  0x39   : > { %630 = vmatpush1.msra.mxu0 %v394_v24  ;;  %900 = vmatpush3.msra.mxu1 %v514_v45 }
  0x3a   : > { %631 = vmatprep.subr.mxu0 %v1059_v2  ;;  %901 = vmatprep.subr.mxu1 %v1059_v2 }
  0x3b   : > { %632 = vmatpush1.msra.mxu0 %v393_v26  ;;  %902 = vmatpush3.msra.mxu1 %v513_v46 }
  0x3c   : > { %647 = vmatprep.subr.mxu0 %v1059_v2  ;;  %903 = vmatprep.subr.mxu1 %v1059_v2 }
  0x3d   : > { %648 = vmatpush2.msra.mxu0 %v417_v28  ;;  %904 = vmatpush3.msra.mxu1 %v512_v47 }
  0x3e   : > { %649 = vmatprep.subr.mxu0 %v1059_v2  ;;  %905 = vmatprep.subr.mxu1 %v1059_v2 }
  0x3f   : > { %650 = vmatpush2.msra.mxu0 %v416_v30  ;;  %906 = vmatpush3.msra.mxu1 %v511_v48 }
  0x40   : > { %651 = vmatprep.subr.mxu0 %v1059_v2  ;;  %907 = vmatprep.mubr.msk.f32.mxu1 %vm1061_vm1, %v1059_v2 }
  0x41   : > { %652 = vmatpush2.msra.mxu0 %v415_v32 }
  0x42   : > { %653 = vmatprep.subr.mxu0 %v1059_v2 }
  0x43   : > { %654 = vmatpush2.msra.mxu0 %v414_v34 }
  0x44   : > { %655 = vmatprep.subr.mxu0 %v1059_v2 }
  0x45   : > { %656 = vmatpush2.msra.mxu0 %v413_v36 }
  0x46   : > { %657 = vmatprep.subr.mxu0 %v1059_v2 }
  0x47   : > { %658 = vmatpush2.msra.mxu0 %v412_v38 }
  0x48   : > { %659 = vmatprep.subr.mxu0 %v1059_v2 }
  0x49   : > { %660 = vmatpush2.msra.mxu0 %v411_v40 }
  0x4a   : > { %661 = vmatprep.subr.mxu0 %v1059_v2 }
  0x4b   : > { %662 = vmatpush2.msra.mxu0 %v410_v42 }
  0x4c   : > { %663 = vmatprep.subr.mxu0 %v1059_v2 }
  0x4d   : > { %664 = vmatpush2.msra.mxu0 %v409_v44 }
  0x9a   : > { %v379_v52 = vpop.permute.xlu0 %378 }
  0x9b   : > { %vm380_vm2 = vcmp.eq.s32.totalorder %v374_v50, %v379_v52  ;;  %vm381_vm3 = vcmp.eq.s32.totalorder %v375_v51, %v379_v52 }
  0x9e   : > { %v386_v53 = vpop.permute.xlu0 %385 }
  0x9f   : > { %vm387_vm4 = vcmp.eq.s32.totalorder %v374_v50, %v386_v53  ;;  %vm388_vm5 = vcmp.eq.s32.totalorder %v375_v51, %v386_v53 }
  0xa0   : > { %vm389_vm6 = vmor %vm380_vm2, %vm387_vm4 }
  0xa1   : > { %vm390_vm8 = vmor %vm381_vm3, %vm388_vm5 }
  0xa2   : > { %v392_v54 = vsel %vm390_vm8, 1.0, %v1059_v2 }
  0xa3   : > { %848 = vmatprep.mubr.msk.f32.mxu0 %vm597_vm7, %v392_v54 }
  0xa4   : > { %849 = vmatmul.mubr.msk.f32.vlgmr.msra.gmra.mxu0 %vm389_vm6, %v1062_v55 }
  0xde   : > { %v491_v57 = vpop.f32.mrf.mxu1 }
  0xdf   : > { %v503_v58 = vadd.f32 %v846_v56, %v491_v57 }
  0xe0   : > { %v493_v2 = vpop.f32.mrf.mxu1 }
  0xe1   : > { %v847_v59 = vmul.f32 -1.442695, %v503_v58 }
  0xe3   : > { %959 = vpow2.f32 %v847_v59 }
  0xf0   : > { %v960_v60 = vpop.eup %959 }
  0xf1   : > { %v507_v61 = vadd.f32 1.0, %v960_v60 }
  0xf3   : > { %961 = vrcp.f32 %v507_v61 }
 0x100   : > { %v962_v62 = vpop.eup %961 }
 0x101   : > { %v510_v63 = vmul.f32 %v962_v62, %v503_v58 }
 0x103   : > { %908 = vmatmul.mubr.f32.vlgmr.msra.gmra.mxu1 %v510_v63 }
 0x164   : > { %v667_v0 = vpop.f32.mrf.mxu0 }
 0x166   : > { %v669_v1 = vpop.f32.mrf.mxu0 }
 0x1c3   : > { %v593_v3 = vpop.f32.mrf.mxu1 }
 0x1c4   : > { %v668_v5 = vadd.f32 %v667_v0, %v593_v3 }
 0x1c5   : > { %v909_v6 = vpop.f32.mrf.mxu1 }
 0x1c6   : > { %v678_v7 = vadd.f32 %v850_v4, %v668_v5 }
 0x1c8   : > { %v851_v8 = vmul.f32 -1.442695, %v678_v7 }
 0x1ca   : > { %963 = vpow2.f32 %v851_v8 }
 0x1d7   : > { %v964_v9 = vpop.eup %963 }
 0x1d8   : > { %v682_v10 = vadd.f32 1.0, %v964_v9 }
 0x1da   : > { %965 = vrcp.f32 %v682_v10 }
 0x1e7   : > { %v966_v11 = vpop.eup %965 }
 0x1e8   : > { %v685_v12 = vmul.f32 %v966_v11, %v678_v7 }
 0x1ea   : > { %686 = vst [vmem:[%s353_s29] sm:$0xff] %v685_v12  ;;  %v687_v13 = vmul.f32 %v685_v12, %v493_v2 }
 0x1eb   : > { %980 = shalt.err (!%p977_p3)
}
 0x1ec   : > { %s981_s27 = scalar_lea.hbm %s1364_s23, 128  ;;  %s985_s24 = scalar_lea.hbm %s1443_s8, 256 }
 0x1ed   : > { %p982_p4 = scmp.ne.s32.totalorder %s1364_s23, %s981_s27  ;;  %p986_p9 = scmp.lt.s32.totalorder %s1364_s23, %s1443_s8 }
 0x1ee   : > { %p987_p10 = scmp.lt.s32.totalorder %s985_s24, %s981_s27 }
 0x1ef   : > { %p983_p7 = pnand %p982_p4, %p1153_p5 }
 0x1f0   : > { %p988_p11 = por %p987_p10, %p986_p9 }
 0x1f1   : > { %p984_p8 = pneg %p983_p7 }
 0x1f3   : > { %p989_p12 = pnand %p988_p11, %p984_p8 }
 0x1f5   : > { %992 = shalt.err (!%p989_p12)
}
 0x1f6   : > { %910 = dma.vmem_to_hbm [thread:$0]  (%p1153_p5), %s1366_s16, 128, %s1364_s23, %s690_s28   ;;  %688 = vst [vmem:[%s1358_s17] sm:$0xff] %v687_v13 }
 0x1f7   : > { %s695_s0 = scalar_lea.sflag [#allocation5], %s1354_s26  ;;  %s993_s1 = scalar_lea.vmem %s1373_s21, 128 }
 0x1f8   : > { %p994_p13 = scmp.ne.s32.totalorder %s1373_s21, %s993_s1  ;;  %s1064_s2 = smov [#allocation4]  }
 0x1f9   : > { %s997_s22 = sshll.u32 %s1064_s2, 4  ;;  %s998_s22 = int_to_ptr.vmem [resolvable:$false] %s997_s22 }
 0x1fa   : > { %p995_p0 = pnand %p994_p13, %p1153_p5  ;;  %s999_s27 = scalar_lea.vmem %s998_s22, 256 }
 0x1fb   : > { %p1000_p2 = scmp.lt.s32.totalorder %s1373_s21, %s998_s22  ;;  %p1001_p3 = scmp.lt.s32.totalorder %s999_s27, %s993_s1 }
 0x1fc   : > { %p996_p1 = pneg %p995_p0 }
 0x1fd   : > { %p1002_p4 = por %p1001_p3, %p1000_p2 }
 0x1ff   : > { %p1003_p7 = pnand %p1002_p4, %p996_p1 }
 0x201   : > { %1006 = shalt.err (!%p1003_p7)
}
 0x202   : > { %s1007_s16 = scalar_lea.hbm %s1371_s25, 128  ;;  %s1011_s23 = scalar_lea.hbm %s1444_s9, 256 }
 0x203   : > { %p1008_p8 = scmp.ne.s32.totalorder %s1371_s25, %s1007_s16  ;;  %p1012_p11 = scmp.lt.s32.totalorder %s1371_s25, %s1444_s9 }
 0x204   : > { %p1013_p12 = scmp.lt.s32.totalorder %s1011_s23, %s1007_s16 }
 0x205   : > { %p1009_p9 = pnand %p1008_p8, %p1153_p5 }
 0x206   : > { %p1014_p13 = por %p1013_p12, %p1012_p11 }
 0x207   : > { %p1010_p10 = pneg %p1009_p9 }
 0x209   : > { %p1015_p0 = pnand %p1014_p13, %p1010_p10 }
 0x20b   : > { %1018 = shalt.err (!%p1015_p0)
}
 0x20c   : > { %911 = dma.vmem_to_hbm [thread:$0]  (%p1153_p5), %s1373_s21, 128, %s1371_s25, %s695_s0  }
 0x20d PF: > { %p921_p1 = scmp.ge.s32.totalorder %s1057_s12, 2  ;;  %s733_s13 = sand.u32 1, %s1045_s30  }
 0x20e   : > { %s734_s24 = scalar_lea.sflag [#allocation3], %s733_s13 }
 0x20f   : > { %p915_p2 = pnand %p921_p1, %p1157_p6 }
 0x211   : > { %p916_p3 = pneg %p915_p2 }
 0x213   : > { %1036 = dma.done.wait (%p916_p3), %s734_s24, 128  }
 0x214   : > { %1038 = vsyncadd (%p916_p3), %s734_s24, 4294967168  ;;  %s743_s14 = scalar_lea.sflag [#allocation5], %s733_s13 }
 0x215   : > { %1040 = dma.done.wait (%p916_p3), %s743_s14, 128  }
 0x216   : > { %1042 = vsyncadd (%p916_p3), %s743_s14, 4294967168  ;;  %p23_p5 = scmp.ge.s32.totalorder %s1140_s15, 4   ;;  %s1453_s30 = smov %s1049_s10 }
 0x217   : > { %s1454_s10 = smov %s1053_s11  ;;  %s1455_s11 = smov %s1151_s18 }
 0x218   : > { %s1456_s12 = smov %s1140_s15  ;;  %25 = sbr.rel (!%p23_p5) target bundleno = 9 (0x9), region = 110 }
 0x21d   :  { %748 = vsyncpa [#allocation3], 1 }
 0x21e   :  { %750 = vsyncpa [#allocation3 + $0x1], 1 }
 0x21f   :  { %751 = vsyncpa [#allocation5], 1 }
 0x220   :  { %753 = vsyncpa [#allocation5 + $0x1], 1 }

</bundles_post_ra>
